<compile_context>
chip_gen: v7x
topology: tpu7x:2x2x1
jax: 0.10.0
libtpu: 0.0.40
codegen_flags: <defaults>
</compile_context>

<pallas_src>
import functools

import jax
import jax.numpy as jnp
from jax import lax
from jax.experimental import pallas as pl
from jax.experimental.pallas import tpu as pltpu

_MIB = 1024 * 1024


def _round_up(x, mult):
    return ((x + mult - 1) // mult) * mult


def _tpu_vmem_capacity_bytes():
    """Trace-time VMEM capacity query; falls back to 128 MiB (v5e/v6e)."""
    try:
        return int(pltpu.get_tpu_info().vmem_capacity_bytes)
    except Exception:
        return 128 * _MIB


def _pick_tiles(m, hidden, inter, x_itemsize, w_itemsize, o_itemsize):
    """Generation-aware (tile_m, tile_i, vmem_limit_bytes)."""
    vmem_cap = _tpu_vmem_capacity_bytes()
    small_vmem = vmem_cap <= 72 * _MIB  # v7x-class: 64 MiB per TensorCore
    if small_vmem:
        tm_cap = 512
        vmem_limit = min(vmem_cap - 8 * _MIB, 56 * _MIB)
    else:
        tm_cap = 1024
        vmem_limit = min(vmem_cap - 24 * _MIB, 104 * _MIB)

    # I-tile: only exact divisors (so gate/up/down weight blocks never carry
    # padded garbage into the reduction); fall back to the full extent, which
    # is always a legal block shape.
    for cand in (256, 512, 128):
        if inter % cand == 0:
            ti = cand
            break
    else:
        ti = inter

    # VMEM budget: double-buffered weight slabs + per-row cost
    # (x double-buffered, out double-buffered, f32 accumulator, f32 (tm,2ti) h).
    w_vmem = 2 * (2 * ti * hidden + hidden * ti) * w_itemsize
    per_row = (2 * hidden * x_itemsize + 2 * hidden * o_itemsize
               + 4 * hidden + 8 * ti)
    headroom = 8 * _MIB
    budget = vmem_limit - w_vmem - headroom
    if budget > 0:
        tm_fit = max(128, (budget // per_row) // 128 * 128)
    else:
        tm_fit = 128
    tm = int(min(tm_cap, tm_fit))

    if m <= tm:
        tm = m
        if small_vmem and m > 8:
            # v7x has 2 TensorCores: guarantee >=2 steps on the 'parallel'
            # m axis so both cores get work for small (decode-sized) M.
            tm = max(8, _round_up(-(-m // 2), 8))
    return tm, ti, int(vmem_limit)


def _swiglu_mlp_kernel(x_ref, wgu_ref, wd_ref, o_ref, acc_ref, *,
                       tile_i, hidden, z_dtype):
    """One (m-tile, i-tile) step of out = (silu(x@Wg.T) * (x@Wu.T)) @ Wd.T."""
    k = pl.program_id(1)

    # Contract the shared last axis of both operands (x @ W.T, PyTorch
    # [out_features, in_features] weight layout) -- no HBM weight transposes.
    dn = (((1,), (1,)), ((), ()))

    x = x_ref[...]
    # Fused gate/up slab: (2, ti, H) -> (2*ti, H).  Merging leading dims is a
    # pure relabeling in VMEM (ti is a sublane-pack multiple), no data move.
    wgu = wgu_ref[...].reshape(2 * tile_i, hidden)
    h = lax.dot_general(x, wgu, dn, preferred_element_type=jnp.float32)

    gate = h[:, :tile_i]
    up = h[:, tile_i:]
    # swish(gate) * up on the VPU/EUP (f32), downcast only at the MXU input.
    z = (gate * jax.nn.sigmoid(gate) * up).astype(z_dtype)

    partial = lax.dot_general(z, wd_ref[...], dn,
                              preferred_element_type=jnp.float32)

    @pl.when(k == 0)
    def _first():
        acc_ref[...] = partial          # no zero-fill + add pass on step 0

    @pl.when(k > 0)
    def _accumulate():
        acc_ref[...] += partial

    @pl.when(k == pl.num_programs(1) - 1)
    def _finalize():
        o_ref[...] = acc_ref[...].astype(o_ref.dtype)


@functools.partial(jax.jit, static_argnames=("tile_m", "tile_i"))
def forgetting_transformer_mlp(x, w_gate_proj, w_down_proj, *,
                               tile_m=None, tile_i=None):
    """x: [..., H]; w_gate_proj: [2I, H]; w_down_proj: [H, I] (PyTorch layouts)."""
    orig_shape = x.shape
    hidden = orig_shape[-1]
    inter = w_down_proj.shape[-1]
    assert w_gate_proj.shape == (2 * inter, hidden)
    assert w_down_proj.shape == (hidden, inter)

    x2d = x.reshape(-1, hidden)
    m = x2d.shape[0]

    tm_auto, ti_auto, vmem_limit = _pick_tiles(
        m, hidden, inter,
        x2d.dtype.itemsize, w_gate_proj.dtype.itemsize, x.dtype.itemsize)
    tm = tm_auto if tile_m is None else tile_m
    ti = ti_auto if tile_i is None else tile_i
    assert inter % ti == 0, "tile_i must divide intermediate_size"
    num_i = inter // ti
    num_m = pl.cdiv(m, tm)
    grid = (num_m, num_i)

    # Free view: [2I, H] -> [2, I, H]; block k picks matching gate/up rows.
    w_gate_3d = w_gate_proj.reshape(2, inter, hidden)

    weight_bytes = (w_gate_proj.size * w_gate_proj.dtype.itemsize
                    + w_down_proj.size * w_down_proj.dtype.itemsize)
    cost = pl.CostEstimate(
        flops=6 * m * hidden * inter,                     # gate + up + down
        transcendentals=m * inter,                        # sigmoid
        bytes_accessed=(num_m * weight_bytes              # weights per m-tile
                        + x2d.size * x2d.dtype.itemsize
                        + m * hidden * x.dtype.itemsize),
    )

    kernel = functools.partial(_swiglu_mlp_kernel, tile_i=ti, hidden=hidden,
                               z_dtype=w_down_proj.dtype)

    out = pl.pallas_call(
        kernel,
        out_shape=jax.ShapeDtypeStruct((m, hidden), x.dtype),
        grid_spec=pltpu.PrefetchScalarGridSpec(
            num_scalar_prefetch=0,
            grid=grid,
            in_specs=[
                # x tile: resident across the inner I loop.
                pl.BlockSpec((tm, hidden), lambda i, k: (i, 0)),
                # fused gate/up slab from [2, I, H]: one DMA stream per step.
                pl.BlockSpec((2, ti, hidden), lambda i, k: (0, k, 0)),
                # down_proj.weight [H, I]: columns [k*ti, (k+1)*ti).
                pl.BlockSpec((hidden, ti), lambda i, k: (0, k)),
            ],
            out_specs=pl.BlockSpec((tm, hidden), lambda i, k: (i, 0)),
            scratch_shapes=[pltpu.VMEM((tm, hidden), jnp.float32)],
        ),
        compiler_params=pltpu.CompilerParams(
            dimension_semantics=("parallel", "arbitrary"),
            vmem_limit_bytes=vmem_limit,
        ),
        cost_estimate=cost,
    )(x2d, w_gate_3d, w_down_proj)

    return out.reshape(orig_shape)


def reference_mlp(x, w_gate_proj, w_down_proj):
    """Pure-JAX reference mirroring the PyTorch forward (swish / SwiGLU path)."""
    inter = w_down_proj.shape[-1]
    h = jnp.einsum("...h,oh->...o", x, w_gate_proj,
                   preferred_element_type=jnp.float32)
    gate, y = h[..., :inter], h[..., inter:]
    z = (gate * jax.nn.sigmoid(gate) * y).astype(w_down_proj.dtype)
    out = jnp.einsum("...i,hi->...h", z, w_down_proj,
                     preferred_element_type=jnp.float32)
    return out.astype(x.dtype)


if __name__ == "__main__":
    # Module config (small): hidden_size=128, hidden_ratio=4 (default)
    hidden_size = 128
    hidden_ratio = 4
    intermediate_size = int(hidden_size * hidden_ratio * 2 / 3)
    intermediate_size = 256 * ((intermediate_size + 256 - 1) // 256)  # -> 512

    batch, seq = 2, 8

    key = jax.random.PRNGKey(0)
    kx, kg, kd = jax.random.split(key, 3)

    # Deterministic synthetic parameters in PyTorch nn.Linear layouts, stored
    # in bf16 (native MXU dtype; halves weight HBM/VMEM traffic).
    dtype = jnp.bfloat16
    x = jax.random.normal(kx, (batch, seq, hidden_size),
                          dtype=jnp.float32).astype(dtype)
    w_gate_proj = (
        jax.random.normal(kg, (2 * intermediate_size, hidden_size),
                          dtype=jnp.float32)
        * (1.0 / jnp.sqrt(hidden_size))
    ).astype(dtype)
    w_down_proj = (
        jax.random.normal(kd, (hidden_size, intermediate_size),
                          dtype=jnp.float32)
        * (1.0 / jnp.sqrt(intermediate_size))
    ).astype(dtype)

    out = forgetting_transformer_mlp(x, w_gate_proj, w_down_proj)
    out = jax.block_until_ready(out)

    ref = reference_mlp(x, w_gate_proj, w_down_proj)
    assert out.shape == (batch, seq, hidden_size)
    assert jnp.allclose(out.astype(jnp.float32), ref.astype(jnp.float32),
                        atol=2e-2, rtol=2e-2), "mismatch vs reference"

    print("KERNEL_OK")
</pallas_src>

<mosaic_0001>
module attributes {stable_mosaic.version = 11 : i64} {
  func.func @_swiglu_mlp_kernel(%arg0: i32, %arg1: i32, %arg2: memref<16x128xbf16, #tpu.memory_space<vmem>>, %arg3: memref<2x256x128xbf16, #tpu.memory_space<vmem>>, %arg4: memref<128x256xbf16, #tpu.memory_space<vmem>>, %arg5: memref<16x128xbf16, #tpu.memory_space<vmem>>, %arg6: memref<16x128xf32, #tpu.memory_space<vmem>>) attributes {dimension_semantics = [#tpu.dimension_semantics<parallel>, #tpu.dimension_semantics<arbitrary>], iteration_bounds = array<i64: 1, 2>, scalar_prefetch = 0 : i64, scratch_operands = 1 : i64, tpu.core_type = #tpu.core_type<tc>, window_params = [{transform_indices = @transform_0, window_bounds = array<i64: 16, 128>}, {transform_indices = @transform_1, window_bounds = array<i64: 2, 256, 128>}, {transform_indices = @transform_2, window_bounds = array<i64: 128, 256>}, {transform_indices = @transform_3, window_bounds = array<i64: 16, 128>}]} {
    %c0 = arith.constant 0 : index
    %c0_0 = arith.constant 0 : index
    %0 = vector.load %arg2[%c0, %c0_0] : memref<16x128xbf16, #tpu.memory_space<vmem>>, vector<16x128xbf16>
    %c0_1 = arith.constant 0 : index
    %c0_2 = arith.constant 0 : index
    %c0_3 = arith.constant 0 : index
    %1 = vector.load %arg3[%c0_1, %c0_2, %c0_3] : memref<2x256x128xbf16, #tpu.memory_space<vmem>>, vector<2x256x128xbf16>
    %2 = vector.shape_cast %1 : vector<2x256x128xbf16> to vector<512x128xbf16>
    %cst = arith.constant dense<0.000000e+00> : vector<16x512xf32>
    %3 = tpu.matmul %0, %2, %cst {dimension_numbers = #tpu.dot_dimension_numbers<[1], [1], [0], [0], [0, 0, 1, 0], [], []>} : vector<16x128xbf16>, vector<512x128xbf16>, vector<16x512xf32> -> vector<16x512xf32>
    %4 = vector.extract_strided_slice %3 {offsets = [0, 0], sizes = [16, 256], strides = [1, 1]} : vector<16x512xf32> to vector<16x256xf32>
    %5 = vector.extract_strided_slice %3 {offsets = [0, 256], sizes = [16, 256], strides = [1, 1]} : vector<16x512xf32> to vector<16x256xf32>
    %6 = arith.negf %4 : vector<16x256xf32>
    %7 = math.exp %6 : vector<16x256xf32>
    %cst_4 = arith.constant 1.000000e+00 : f32
    %8 = vector.broadcast %cst_4 : f32 to vector<16x256xf32>
    %9 = arith.addf %8, %7 : vector<16x256xf32>
    %10 = arith.divf %8, %9 : vector<16x256xf32>
    %11 = arith.mulf %4, %10 : vector<16x256xf32>
    %12 = arith.mulf %11, %5 : vector<16x256xf32>
    %13 = arith.truncf %12 : vector<16x256xf32> to vector<16x256xbf16>
    %c0_5 = arith.constant 0 : index
    %c0_6 = arith.constant 0 : index
    %14 = vector.load %arg4[%c0_5, %c0_6] : memref<128x256xbf16, #tpu.memory_space<vmem>>, vector<128x256xbf16>
    %cst_7 = arith.constant dense<0.000000e+00> : vector<16x128xf32>
    %15 = tpu.matmul %13, %14, %cst_7 {dimension_numbers = #tpu.dot_dimension_numbers<[1], [1], [0], [0], [0, 0, 1, 0], [], []>} : vector<16x256xbf16>, vector<128x256xbf16>, vector<16x128xf32> -> vector<16x128xf32>
    %c0_i32 = arith.constant 0 : i32
    %16 = arith.cmpi eq, %arg1, %c0_i32 : i32
    %17 = arith.extui %16 : i1 to i32
    %c0_i32_8 = arith.constant 0 : i32
    %18 = arith.cmpi ne, %17, %c0_i32_8 : i32
    scf.if %18 {
      %c0_12 = arith.constant 0 : index
      %c0_13 = arith.constant 0 : index
      %25 = vector.load %arg6[%c0_12, %c0_13] : memref<16x128xf32, #tpu.memory_space<vmem>>, vector<16x128xf32>
      tpu.vector_store %arg6[%c0_12, %c0_13], %15 {strides = array<i32>} : memref<16x128xf32, #tpu.memory_space<vmem>>, vector<16x128xf32>,
    } else {
    }
    %c0_i32_9 = arith.constant 0 : i32
    %19 = arith.cmpi sgt, %arg1, %c0_i32_9 : i32
    %20 = arith.extui %19 : i1 to i32
    %c0_i32_10 = arith.constant 0 : i32
    %21 = arith.cmpi ne, %20, %c0_i32_10 : i32
    scf.if %21 {
      %c0_12 = arith.constant 0 : index
      %c0_13 = arith.constant 0 : index
      %25 = vector.load %arg6[%c0_12, %c0_13] : memref<16x128xf32, #tpu.memory_space<vmem>>, vector<16x128xf32>
      %26 = arith.addf %25, %15 : vector<16x128xf32>
      %c0_14 = arith.constant 0 : index
      %c0_15 = arith.constant 0 : index
      %27 = vector.load %arg6[%c0_14, %c0_15] : memref<16x128xf32, #tpu.memory_space<vmem>>, vector<16x128xf32>
      tpu.vector_store %arg6[%c0_14, %c0_15], %26 {strides = array<i32>} : memref<16x128xf32, #tpu.memory_space<vmem>>, vector<16x128xf32>,
    } else {
    }
    %c1_i32 = arith.constant 1 : i32
    %22 = arith.cmpi eq, %arg1, %c1_i32 : i32
    %23 = arith.extui %22 : i1 to i32
    %c0_i32_11 = arith.constant 0 : i32
    %24 = arith.cmpi ne, %23, %c0_i32_11 : i32
    scf.if %24 {
      %c0_12 = arith.constant 0 : index
      %c0_13 = arith.constant 0 : index
      %25 = vector.load %arg6[%c0_12, %c0_13] : memref<16x128xf32, #tpu.memory_space<vmem>>, vector<16x128xf32>
      %26 = arith.truncf %25 : vector<16x128xf32> to vector<16x128xbf16>
      %c0_14 = arith.constant 0 : index
      %c0_15 = arith.constant 0 : index
      %27 = vector.load %arg5[%c0_14, %c0_15] : memref<16x128xbf16, #tpu.memory_space<vmem>>, vector<16x128xbf16>
      tpu.vector_store %arg5[%c0_14, %c0_15], %26 {strides = array<i32>} : memref<16x128xbf16, #tpu.memory_space<vmem>>, vector<16x128xbf16>,
    } else {
    }
    return
  }
  func.func @transform_0(%arg0: i32, %arg1: i32) -> (i32, i32) {
    %c0_i32 = arith.constant 0 : i32
    %c0_i32_0 = arith.constant 0 : i32
    return %arg0, %c0_i32 : i32, i32
  }
  func.func @transform_1(%arg0: i32, %arg1: i32) -> (i32, i32, i32) {
    %c0_i32 = arith.constant 0 : i32
    %c0_i32_0 = arith.constant 0 : i32
    %c0_i32_1 = arith.constant 0 : i32
    return %c0_i32, %arg1, %c0_i32_0 : i32, i32, i32
  }
  func.func @transform_2(%arg0: i32, %arg1: i32) -> (i32, i32) {
    %c0_i32 = arith.constant 0 : i32
    %c0_i32_0 = arith.constant 0 : i32
    return %c0_i32, %arg1 : i32, i32
  }
  func.func @transform_3(%arg0: i32, %arg1: i32) -> (i32, i32) {
    %c0_i32 = arith.constant 0 : i32
    %c0_i32_0 = arith.constant 0 : i32
    return %arg0, %c0_i32 : i32, i32
  }
}

</mosaic_0001>

<bundles_post_ra>
// kernel: forgetting_transformer_mlp.1
= control target key start
LH: loop header
LB: loop body
LE: loop exit
PB: predicated region body
PF: predicated region fallthrough
CT: control target
= control target key end

     0   :  { %8 = vsyncpa [#allocation4], 0  ;;  %s1661_s0 = inlined_call_operand.hbm [shape: bf16[16,128], index: 0, kind: input, shape index: {}]   ;;  %s1662_s1 = inlined_call_operand.hbm [shape: bf16[2,512,128], index: 1, kind: input, shape index: {}]   ;;  %s1663_s2 = inlined_call_operand.hbm [shape: bf16[128,512], index: 2, kind: input, shape index: {}]   ;;  %s1664_s3 = inlined_call_operand.hbm [shape: bf16[16,128], index: 3, kind: output, shape index: {}]  }
   0x1   :  { %9 = vsyncpa [#allocation7], 0 }
   0x2   :  { %11 = vsyncpa [#allocation7 + $0x1], 0 }
   0x3   :  { %12 = vsyncpa [#allocation5], 0  ;;  %s1408_s12 = smov 0   ;;  %s1410_s13 = smov 0  }
   0x4   :  { %s1412_s14 = smov 0   ;;  %s1414_s15 = smov 0  }
   0x5   :  { %s1416_s16 = smov 0   ;;  %s1418_s17 = smov 0  }
   0x6 LB: > { %s1437_s18 = sadd.s32 4294967295, %s1370_s17   ;;  %s27_s19 = sadd.s32 1, %s1366_s16  ;;  %s1370_s17 = sphi %s1418_s17, %s18_s17   ;;  %s1366_s16 = sphi %s1416_s16, %s1682_s16   ;;  %s1362_s15 = sphi %s1414_s15, %s1681_s15   ;;  %s1358_s14 = sphi %s1412_s14, %s1680_s14   ;;  %s1354_s13 = sphi %s1410_s13, %s1679_s13   ;;  %s1350_s12 = sphi %s1408_s12, %s1678_s12  }
   0x7   : > { %p28_p0 = scmp.ge.s32.totalorder %s27_s19, 2  ;;  %s63_s20 = sadd.s32 1, %s1358_s14 }
   0x8   : > { %p70_p1 = scmp.ne.s32.totalorder %s1358_s14, %s1354_s13  ;;  %p71_p2 = scmp.eq.s32.totalorder %s1370_s17, 0 }
   0x9   : > { %s1684_s19 = smov (%p28_p0, %s27_s19), 0  ;;  %p76_p4 = scmp.ne.s32.totalorder %s1354_s13, %s1350_s12 }
   0xa   : > { %p1446_p3 = por %p71_p2, %p70_p1  ;;  %s60_s22 = ssub.s32 %s1366_s16, %s1684_s19 }
   0xb   : > { %p1665_p5 = scmp.eq.s32.totalorder %s1437_s18, 0  ;;  %p61_p6 = scmp.eq.s32.totalorder %s60_s22, 0 }
   0xc   : > { %s1669_s21 = scalar_select %p1446_p3, 1, 0 }
   0xd   : > { %p945_p7 = scmp.ge.s32.totalorder %s1370_s17, 1  ;;  %p1457_p8 = por %p1665_p5, %p76_p4 }
   0xe   : > { %p139_p9 = scmp.lt.s32.totalorder %s1370_s17, 3  ;;  %s1372_s26 = smov [#allocation3]  }
   0xf   : > { %s1670_s23 = scalar_select %p1457_p8, 1, 0 }
  0x10   : > { %s1463_s24 = scalar_select %p61_p6, %s1358_s14, %s63_s20  }
  0x11   : > { %p1465_p10 = pnand %p945_p7, %p139_p9  ;;  %s154_s27 = sshll.u32 %s1372_s26, 4  ;;  %s155_s27 = int_to_ptr.vmem [resolvable:$true] %s154_s27 }
  0x12   : > { %s1230_s4 = scalar_lea.hbm %s1661_s0, 128 }
  0x13   : > { %s1671_s25 = scalar_select %p1465_p10, 1, 0 }
  0x14   : > { %p1086_p11 = pneg %p1465_p10  ;;  %p1231_p13 = scmp.ne.s32.totalorder %s1661_s0, %s1230_s4 }
  0x15   : > { %p1237_p4 = scmp.lt.u32.totalorder %s1230_s4, %s1661_s0 }
  0x16   : > { %p1473_p12 = pnand %p1086_p11, %p1665_p5 }
  0x18   : > { %p1232_p0 = pneg %p1473_p12 }
  0x1a   : > { %p1233_p1 = pnand %p1232_p0, %p1231_p13 }
  0x1c   : > { %p1234_p2 = pneg %p1233_p1 }
  0x1e   : > { %p1239_p6 = pnand %p1237_p4, %p1234_p2 }
  0x20   : > { %1242 = shalt.err (!%p1239_p6)
}
  0x21   : > { %s1243_s9 = scalar_lea.vmem %s155_s27, 128  ;;  %p1251_p5 = scmp.lt.s32.totalorder %s155_s27, %s155_s27 }
  0x22   : > { %p1244_p7 = scmp.ne.s32.totalorder %s155_s27, %s1243_s9  ;;  %p1252_p8 = scmp.lt.s32.totalorder %s1243_s9, %s1243_s9 }
  0x24   : > { %p1246_p9 = pnand %p1244_p7, %p1232_p0  ;;  %p1253_p10 = por %p1252_p8, %p1251_p5 }
  0x26   : > { %p1247_p11 = pneg %p1246_p9 }
  0x28   : > { %p1254_p3 = pnand %p1253_p10, %p1247_p11 }
  0x2a   : > { %1257 = shalt.err (!%p1254_p3)
}
  0x2b   : > { %s1373_s10 = smov 64   ;;  %s1374_s11 = smov 4  }
  0x2c   : > { %1089 = dma.hbm_to_vmem [thread:$0]  (!%p1473_p12), %s1661_s0, 128, %s155_s27, [#allocation4], %s1373_s10, %s1373_s10, %s1374_s11  }
  0x2d   : > { %p947_p13 = scmp.ge.s32.totalorder %s1370_s17, 2 }
  0x2f   : > { %164 = sbr.rel (%p947_p13) target bundleno = 94 (0x5e), region = 20 }
  0x36   : > { %s168_s22 = sand.u32 1, %s1370_s17   ;;  %s170_s26 = sand.u32 1, %s1358_s14  }
  0x37   : > { %s948_s29 = sshll.u32 %s170_s26, 8  ;;  %s1022_s28 = sshll.u32 %s1366_s16, 11 }
  0x38   : > { %s178_s27 = scalar_lea.hbm %s1662_s1, %s1022_s28  ;;  %p1673_p3 = scmp.ne.s32.totalorder %s1669_s21, 0 }
  0x39   : > { %s172_s6 = scalar_lea.vmem [#allocation6], %s948_s29  ;;  %s1375_s9 = smov 4096  }
  0x3a   : > { %s1069_s5 = scalar_select %p1673_p3, [#allocation0], [#allocation12] }
  0x3b   : > { %s191_s7 = sshll.u32 %s172_s6, 4  ;;  %1070 = sst [smem:[#allocation11]] (%p1673_p3), %s1375_s9  ;;  %s192_s7 = int_to_ptr.vmem [resolvable:$true] %s191_s7 }
  0x3c   : > { %s183_s8 = sld [smem:[%s1069_s5]]   ;;  %s1376_s10 = smov 2048  }
  0x3d   : > { %1071 = sst [smem:[#allocation11 + $0x1]] (%p1673_p3), %s1376_s10  ;;  %s1377_s11 = smov 32  }
  0x3e   : > { %1072 = sst [smem:[#allocation11 + $0x2]] (%p1673_p3), %s1377_s11  ;;  %s1378_s12 = smov 64  }
  0x3f   : > { %1073 = sst [smem:[#allocation11 + $0x3]] (%p1673_p3), %s1378_s12  ;;  %s1379_s29 = smov 4  }
  0x40   : > { %1074 = sst [smem:[#allocation11 + $0x4]] (%p1673_p3), %s1378_s12  ;;  %s1514_s30 = scalar_lea.sflag [#allocation7], %s168_s22 }
  0x41   : > { %1075 = sst [smem:[#allocation11 + $0x5]] (%p1673_p3), %s1379_s29  ;;  %s1380_s4 = smov [#allocation10]  }
  0x42   : > { %s951_s20 = sshll.u32 %s183_s8, 26  ;;  %s953_s5 = sshll.u32 %s170_s26, 7 }
  0x43   : > { %s952_s28 = sadd.s32 134217728, %s951_s20  ;;  %s1023_s6 = sshll.u32 %s1366_s16, 7 }
  0x44   : > { %1076 = dma.general (%p1673_p3), %s178_s27, 4096, %s192_s7, %s1514_s30, %s1380_s4, [#allocation11], %s952_s28, 0  }
  0x45   : > { %s1523_s11 = scalar_lea.hbm %s1663_s2, %s1023_s6  ;;  %s218_s8 = scalar_lea.vmem [#allocation8], %s953_s5 }
  0x46   : > { %s225_s22 = sshll.u32 %s218_s8, 4  ;;  %s1258_s12 = scalar_lea.hbm %s1523_s11, 2048  ;;  %s1525_s22 = int_to_ptr.vmem [resolvable:$true] %s225_s22 }
  0x47   : > { %p1259_p5 = scmp.ne.s32.totalorder %s1523_s11, %s1258_s12  ;;  %s1262_s7 = scalar_lea.hbm %s1663_s2, 4096 }
  0x48   : > { %p1263_p12 = scmp.lt.u32.totalorder %s1523_s11, %s1663_s2  ;;  %p1264_p0 = scmp.lt.u32.totalorder %s1262_s7, %s1258_s12 }
  0x49   : > { %p1260_p8 = pnand %p1259_p5, %p1673_p3  ;;  %p1266_p2 = scmp.lt.u32.totalorder %s1258_s12, %s1523_s11 }
  0x4a   : > { %p1265_p1 = por %p1264_p0, %p1263_p12 }
  0x4b   : > { %p1261_p10 = pneg %p1260_p8 }
  0x4c   : > { %p1267_p4 = por %p1266_p2, %p1265_p1 }
  0x4e   : > { %p1268_p6 = pnand %p1267_p4, %p1261_p10 }
  0x50   : > { %1271 = shalt.err (!%p1268_p6)
}
  0x51   : > { %s1272_s28 = scalar_lea.vmem %s1525_s22, 2048  ;;  %s1381_s4 = smov [#allocation8]  }
  0x52   : > { %p1273_p7 = scmp.ne.s32.totalorder %s1525_s22, %s1272_s28  ;;  %s1276_s5 = sshll.u32 %s1381_s4, 4  ;;  %s1277_s5 = int_to_ptr.vmem [resolvable:$false] %s1276_s5 }
  0x53   : > { %s1278_s6 = scalar_lea.vmem %s1277_s5, 4096  ;;  %p1279_p13 = scmp.lt.s32.totalorder %s1525_s22, %s1277_s5 }
  0x54   : > { %p1274_p9 = pnand %p1273_p7, %p1673_p3  ;;  %p1280_p5 = scmp.lt.s32.totalorder %s1278_s6, %s1272_s28 }
  0x56   : > { %p1275_p11 = pneg %p1274_p9  ;;  %p1281_p8 = por %p1280_p5, %p1279_p13 }
  0x58   : > { %p1282_p12 = pnand %p1281_p8, %p1275_p11 }
  0x5a   : > { %1285 = shalt.err (!%p1282_p12)
}
  0x5b   : > { %s1382_s9 = smov 256   ;;  %s1383_s10 = smov 128  }
  0x5c   : > { %s1384_s8 = smov 8  }
  0x5d   : > { %1077 = dma.hbm_to_vmem [thread:$0]  (%p1673_p3), %s1523_s11, 2048, %s1525_s22, %s1514_s30, %s1382_s9, %s1383_s10, %s1384_s8  }
  0x5e PF: > { %p1674_p10 = scmp.ne.s32.totalorder %s1671_s25, 0 }
  0x5f   : > { %p1675_p0 = scmp.eq.s32.totalorder (!%p1674_p10), %s1437_s18, 0 }
  0x60   : > { %237 = sbr.rel (%p1674_p10) target bundleno = 683 (0x2ab), region = 32 }
  0x67   : > { %1337 = dma.done.wait (%p1675_p0), [#allocation4], 128   ;;  %p1676_p1 = pmov %p1675_p0 }
  0x68   : > { %s243_s12 = sand.u32 1, %s1437_s18   ;;  %s245_s26 = sand.u32 1, %s1354_s13  }
  0x69   : > { %1339 = vsyncadd (%p1676_p1), [#allocation4], 4294967168  ;;  %s958_s27 = sshll.u32 %s245_s26, 8  ;;  %s244_s21 = scalar_lea.sflag [#allocation7], %s243_s12 }
  0x6a   : > { %s1559_s30 = scalar_lea.vmem [#allocation6], %s958_s27  ;;  %p1677_p3 = scmp.ne.s32.totalorder %s1670_s23, 0 }
  0x6c   : > { %1341 = dma.done.wait (%p1677_p3), %s244_s21, 6144  }
  0x6d   : > { %1343 = vsyncadd (%p1677_p3), %s244_s21, 4294961152  ;;  %v1157_v0 = vld [vmem:[%s1559_s30 + $0x40] sm:$0xff]   ;;  %v1159_v2 = vld [vmem:[%s1559_s30 + $0x48] sm:$0xff]   ;;  %s959_s23 = sshll.u32 %s245_s26, 7  ;;  %p1013_p2 = scmp.ne.s32.totalorder %s1362_s15, 0 }
  0x6e   : > { %v1158_v1 = vld [vmem:[%s1559_s30] sm:$0xff]   ;;  %1031 = vmatprep.subr.bf16.mxu0 %v1157_v0  ;;  %v1160_v3 = vld [vmem:[%s1559_s30 + $0x8] sm:$0xff]   ;;  %v1161_v4 = vld [vmem:[%s1559_s30 + $0x50] sm:$0xff]   ;;  %s1587_s25 = scalar_lea.vmem [#allocation8], %s959_s23 }
  0x6f   : > { %1032 = vmatpush3.bf16.xpose.msra.mxu0 %v1158_v1  ;;  %v1165_v5 = vld [vmem:[%s1559_s30 + $0xc0] sm:$0xff]   ;;  %v1169_v7 = vld [vmem:[%s1559_s30 + $0xc8] sm:$0xff]   ;;  %v1162_v8 = vld [vmem:[%s1559_s30 + $0x10] sm:$0xff]  }
  0x70   : > { %1033 = vmatprep.subr.bf16.mxu0 %v1159_v2  ;;  %v1166_v6 = vld [vmem:[%s1559_s30 + $0x80] sm:$0xff]   ;;  %1049 = vmatprep.subr.bf16.mxu1 %v1165_v5  ;;  %v1163_v9 = vld [vmem:[%s1559_s30 + $0x58] sm:$0xff]   ;;  %v1170_v10 = vld [vmem:[%s1559_s30 + $0x88] sm:$0xff]  }
  0x71   : > { %1050 = vmatpush3.bf16.xpose.msra.mxu1 %v1166_v6  ;;  %v1173_v11 = vld [vmem:[%s1559_s30 + $0xd0] sm:$0xff]   ;;  %v1164_v12 = vld [vmem:[%s1559_s30 + $0x18] sm:$0xff]   ;;  %v1167_v13 = vld [vmem:[%s1559_s30 + $0x60] sm:$0xff]  }
  0x72   : > { %1051 = vmatprep.subr.bf16.mxu1 %v1169_v7  ;;  %v1174_v14 = vld [vmem:[%s1559_s30 + $0x90] sm:$0xff]   ;;  %v1177_v15 = vld [vmem:[%s1559_s30 + $0xd8] sm:$0xff]   ;;  %v1168_v17 = vld [vmem:[%s1559_s30 + $0x20] sm:$0xff]  }
  0x73   : > { %v1183_v16 = vld [vmem:[#allocation3] sm:$0xff]   ;;  %v1171_v18 = vld [vmem:[%s1559_s30 + $0x68] sm:$0xff]   ;;  %v1181_v20 = vld [vmem:[%s1559_s30 + $0xe0] sm:$0xff]  }
  0x74   : > { %1047 = vmatprep.mubr.bf16.mxu0 %v1183_v16  ;;  %1065 = vmatprep.mubr.bf16.mxu1 %v1183_v16  ;;  %v1178_v19 = vld [vmem:[%s1559_s30 + $0x98] sm:$0xff]   ;;  %v1172_v21 = vld [vmem:[%s1559_s30 + $0x28] sm:$0xff]   ;;  %v1182_v22 = vld [vmem:[%s1559_s30 + $0xa0] sm:$0xff]  }
  0x75   : > { %v1175_v23 = vld [vmem:[%s1559_s30 + $0x70] sm:$0xff]   ;;  %v1184_v24 = vld [vmem:[%s1559_s30 + $0xe8] sm:$0xff]   ;;  %v1179_v27 = vld [vmem:[%s1559_s30 + $0x78] sm:$0xff]  }
  0x76   : > { %v1176_v25 = vld [vmem:[%s1559_s30 + $0x30] sm:$0xff]   ;;  %v1185_v26 = vld [vmem:[%s1559_s30 + $0xa8] sm:$0xff]   ;;  %v1180_v29 = vld [vmem:[%s1559_s30 + $0x38] sm:$0xff]  }
  0x77   : > { %1034 = vmatpush3.bf16.xpose.msra.mxu0 %v1160_v3  ;;  %v1186_v28 = vld [vmem:[%s1559_s30 + $0xf0] sm:$0xff]   ;;  %v1188_v31 = vld [vmem:[%s1559_s30 + $0xf8] sm:$0xff]   ;;  %v1192_v32 = vld [vmem:[%s1587_s25 + $0x4] ss:$8 sps:$4 sm:$0xff]  }
  0x78   : > { %1035 = vmatprep.subr.bf16.mxu0 %v1161_v4  ;;  %v1187_v30 = vld [vmem:[%s1559_s30 + $0xb0] sm:$0xff]   ;;  %v1189_v33 = vld [vmem:[%s1559_s30 + $0xb8] sm:$0xff]   ;;  %v1190_v34 = vld [vmem:[%s1587_s25] ss:$8 sps:$4 sm:$0xff]  }
  0x79   : > { %1052 = vmatpush3.bf16.xpose.msra.mxu1 %v1170_v10  ;;  %v1195_v35 = vld [vmem:[%s1587_s25 + $0x14] ss:$8 sps:$4 sm:$0xff]   ;;  %v1193_v36 = vld [vmem:[%s1587_s25 + $0x10] ss:$8 sps:$4 sm:$0xff]   ;;  %v1198_v37 = vld [vmem:[%s1587_s25 + $0x24] ss:$8 sps:$4 sm:$0xff]  }
  0x7a   : > { %1053 = vmatprep.subr.bf16.mxu1 %v1173_v11  ;;  %v1196_v38 = vld [vmem:[%s1587_s25 + $0x20] ss:$8 sps:$4 sm:$0xff]   ;;  %v1201_v39 = vld [vmem:[%s1587_s25 + $0x34] ss:$8 sps:$4 sm:$0xff]   ;;  %v1199_v40 = vld [vmem:[%s1587_s25 + $0x30] ss:$8 sps:$4 sm:$0xff]  }
  0x7b   : > { %v1204_v41 = vld [vmem:[%s1587_s25 + $0x44] ss:$8 sps:$4 sm:$0xff]   ;;  %v1202_v42 = vld [vmem:[%s1587_s25 + $0x40] ss:$8 sps:$4 sm:$0xff]   ;;  %v1207_v43 = vld [vmem:[%s1587_s25 + $0x54] ss:$8 sps:$4 sm:$0xff]  }
  0x7c   : > { %v1205_v44 = vld [vmem:[%s1587_s25 + $0x50] ss:$8 sps:$4 sm:$0xff]   ;;  %v1210_v45 = vld [vmem:[%s1587_s25 + $0x64] ss:$8 sps:$4 sm:$0xff]   ;;  %v1208_v46 = vld [vmem:[%s1587_s25 + $0x60] ss:$8 sps:$4 sm:$0xff]  }
  0x7d   : > { %v1213_v47 = vld [vmem:[%s1587_s25 + $0x74] ss:$8 sps:$4 sm:$0xff]   ;;  %v1211_v48 = vld [vmem:[%s1587_s25 + $0x70] ss:$8 sps:$4 sm:$0xff]  }
  0x7f   : > { %1036 = vmatpush3.bf16.xpose.msra.mxu0 %v1162_v8 }
  0x80   : > { %1037 = vmatprep.subr.bf16.mxu0 %v1163_v9 }
  0x81   : > { %1054 = vmatpush3.bf16.xpose.msra.mxu1 %v1174_v14 }
  0x82   : > { %1055 = vmatprep.subr.bf16.mxu1 %v1177_v15 }
  0x87   : > { %1038 = vmatpush3.bf16.xpose.msra.mxu0 %v1164_v12 }
  0x88   : > { %1039 = vmatprep.subr.bf16.mxu0 %v1167_v13 }
  0x89   : > { %1056 = vmatpush3.bf16.xpose.msra.mxu1 %v1178_v19 }
  0x8a   : > { %1057 = vmatprep.subr.bf16.mxu1 %v1181_v20 }
  0x8f   : > { %1040 = vmatpush3.bf16.xpose.msra.mxu0 %v1168_v17 }
  0x90   : > { %1041 = vmatprep.subr.bf16.mxu0 %v1171_v18 }
  0x91   : > { %1058 = vmatpush3.bf16.xpose.msra.mxu1 %v1182_v22 }
  0x92   : > { %1059 = vmatprep.subr.bf16.mxu1 %v1184_v24 }
  0x97   : > { %1042 = vmatpush3.bf16.xpose.msra.mxu0 %v1172_v21 }
  0x98   : > { %1043 = vmatprep.subr.bf16.mxu0 %v1175_v23 }
  0x99   : > { %1060 = vmatpush3.bf16.xpose.msra.mxu1 %v1185_v26 }
  0x9a   : > { %1061 = vmatprep.subr.bf16.mxu1 %v1186_v28 }
  0x9f   : > { %1044 = vmatpush3.bf16.xpose.msra.mxu0 %v1176_v25 }
  0xa0   : > { %1045 = vmatprep.subr.bf16.mxu0 %v1179_v27 }
  0xa1   : > { %1062 = vmatpush3.bf16.xpose.msra.mxu1 %v1187_v30 }
  0xa2   : > { %1063 = vmatprep.subr.bf16.mxu1 %v1188_v31 }
  0xa7   : > { %1046 = vmatpush3.bf16.xpose.msra.mxu0 %v1180_v29 }
  0xa8   : > { %764 = vmatprep.subr.bf16.mxu0 %v1192_v32 }
  0xa9   : > { %1064 = vmatpush3.bf16.xpose.msra.mxu1 %v1189_v33 }
  0xae   : > { %1048 = vmatmul.mubr.bf16.vlgmr.msra.gmra.mrb[0].mxu0 %v1183_v16 }
  0xaf   : > { %765 = vmatpush1.bf16.xpose.msra.mxu0 %v1190_v34 }
  0xb0   : > { %766 = vmatprep.subr.bf16.mxu0 %v1195_v35  ;;  %1066 = vmatmul.mubr.bf16.vlgmr.msra.gmra.mrb[0].mxu1 %v1183_v16 }
  0xb7   : > { %767 = vmatpush1.bf16.xpose.msra.mxu0 %v1193_v36 }
  0xb8   : > { %768 = vmatprep.subr.bf16.mxu0 %v1198_v37 }
  0xbf   : > { %769 = vmatpush1.bf16.xpose.msra.mxu0 %v1196_v38 }
  0xc0   : > { %770 = vmatprep.subr.bf16.mxu0 %v1201_v39 }
  0xc7   : > { %771 = vmatpush1.bf16.xpose.msra.mxu0 %v1199_v40 }
  0xc8   : > { %772 = vmatprep.subr.bf16.mxu0 %v1204_v41 }
  0xcf   : > { %773 = vmatpush1.bf16.xpose.msra.mxu0 %v1202_v42 }
  0xd0   : > { %774 = vmatprep.subr.bf16.mxu0 %v1207_v43 }
  0xd7   : > { %775 = vmatpush1.bf16.xpose.msra.mxu0 %v1205_v44 }
  0xd8   : > { %776 = vmatprep.subr.bf16.mxu0 %v1210_v45 }
  0xdf   : > { %777 = vmatpush1.bf16.xpose.msra.mxu0 %v1208_v46 }
  0xe0   : > { %778 = vmatprep.subr.bf16.mxu0 %v1213_v47 }
  0xe7   : > { %779 = vmatpush1.bf16.xpose.msra.mxu0 %v1211_v48 }
 0x181   : > { %v582_v49 = vpop.f32.mrb[0].mxu0 }
 0x182   : > { %v993_v50 = vmul.f32 -1.442695, %v582_v49  ;;  %v584_v51 = vpop.f32.mrb[1].mxu0 }
 0x183   : > { %v994_v52 = vmul.f32 -1.442695, %v584_v51  ;;  %v586_v53 = vpop.f32.mrb[2].mxu0  ;;  %v625_v57 = vpop.f32.mrb[0].mxu1 }
 0x184   : > { %1214 = vpow2.f32 %v993_v50  ;;  %v995_v54 = vmul.f32 -1.442695, %v586_v53  ;;  %v588_v55 = vpop.f32.mrb[3].mxu0  ;;  %v627_v58 = vpop.f32.mrb[1].mxu1 }
 0x185   : > { %1216 = vpow2.f32 %v994_v52  ;;  %v996_v56 = vmul.f32 -1.442695, %v588_v55  ;;  %v629_v59 = vpop.f32.mrb[2].mxu1 }
 0x186   : > { %1218 = vpow2.f32 %v995_v54  ;;  %v631_v60 = vpop.f32.mrb[3].mxu1 }
 0x187   : > { %1220 = vpow2.f32 %v996_v56 }
 0x18e   : > { %v1215_v61 = vpop.eup %1214 }
 0x18f   : > { %v1217_v62 = vpop.eup %1216  ;;  %v646_v63 = vadd.f32 1.0, %v1215_v61 }
 0x190   : > { %v1219_v0 = vpop.eup %1218  ;;  %v647_v1 = vadd.f32 1.0, %v1217_v62 }
 0x191   : > { %v1221_v2 = vpop.eup %1220  ;;  %1222 = vrcp.f32 %v646_v63  ;;  %v648_v3 = vadd.f32 1.0, %v1219_v0 }
 0x192   : > { %1224 = vrcp.f32 %v647_v1  ;;  %v649_v4 = vadd.f32 1.0, %v1221_v2 }
 0x193   : > { %1226 = vrcp.f32 %v648_v3 }
 0x194   : > { %1228 = vrcp.f32 %v649_v4 }
 0x19b   : > { %v1223_v5 = vpop.eup %1222 }
 0x19c   : > { %v1225_v6 = vpop.eup %1224  ;;  %v658_v7 = vmul.f32 %v1223_v5, %v582_v49 }
 0x19d   : > { %v1227_v8 = vpop.eup %1226  ;;  %v659_v9 = vmul.f32 %v1225_v6, %v584_v51 }
 0x19e   : > { %v1229_v10 = vpop.eup %1228  ;;  %v660_v11 = vmul.f32 %v1227_v8, %v586_v53  ;;  %v662_v12 = vmul.f32 %v658_v7, %v625_v57 }
 0x19f   : > { %v661_v13 = vmul.f32 %v1229_v10, %v588_v55  ;;  %v663_v14 = vmul.f32 %v659_v9, %v627_v58 }
 0x1a0   : > { %v664_v15 = vmul.f32 %v660_v11, %v629_v59 }
 0x1a1   : > { %v665_v16 = vmul.f32 %v661_v13, %v631_v60 }
 0x1a2   : > { %v666_v17 = vpack.c.bf16 %v664_v15, %v662_v12 }
 0x1a3   : > { %v667_v18 = vpack.c.bf16 %v665_v16, %v663_v14 }
 0x1a5   : > { %796 = vmatprep.mubr.bf16.mxu0 %v667_v18 }
 0x1a6   : > { %797 = vmatmul.mubr.bf16.vlgmr.msra.gmra.mrb[4].mxu0 %v666_v17 }
 0x276   : > { %808 = sbr.rel (%p1013_p2) target bundleno = 637 (0x27d), region = 48 }
 0x279   : > { %v798_v19 = vpop.f32.mrb[4].mxu0 }
 0x27a   : > { %v800_v20 = vpop.f32.mrb[5].mxu0  ;;  %809 = vst [vmem:[#allocation2] sm:$0xff] (!%p1013_p2), %v798_v19 }
 0x27b   : > { %v801_v21 = vpop.f32.mrb[6].mxu0 }
 0x27c   : > { %v803_v22 = vpop.f32.mrb[7].mxu0  ;;  %810 = vst [vmem:[#allocation2 + $0x8] sm:$0xff] (!%p1013_p2), %v801_v21 }
 0x27d PF: > { %p1014_p4 = scmp.le.s32.totalorder %s1362_s15, 0 }
 0x27f   : > { %814 = sbr.rel (%p1014_p4) target bundleno = 647 (0x287), region = 52 }
 0x281   : > { %v815_v23 = vld [vmem:[#allocation2] sm:$0xff] (!%p1014_p4) }
 0x282   : > { %v817_v25 = vadd.f32 (!%p1014_p4), %v815_v23, %v798_v19 }
 0x283   : > { %v816_v24 = vld [vmem:[#allocation2 + $0x8] sm:$0xff] (!%p1014_p4) }
 0x284   : > { %v818_v26 = vadd.f32 (!%p1014_p4), %v816_v24, %v801_v21  ;;  %819 = vst [vmem:[#allocation2] sm:$0xff] (!%p1014_p4), %v817_v25 }
 0x286   : > { %820 = vst [vmem:[#allocation2 + $0x8] sm:$0xff] %v818_v26 }
 0x287 PF: > { %p1015_p6 = scmp.ne.s32.totalorder %s1362_s15, 1 }
 0x289   : > { %824 = sbr.rel (%p1015_p6) target bundleno = 657 (0x291), region = 56 }
 0x28c   : > { %v825_v27 = vld [vmem:[#allocation2] sm:$0xff] (!%p1015_p6) }
 0x28d   : > { %v826_v28 = vld [vmem:[#allocation2 + $0x8] sm:$0xff] (!%p1015_p6) }
 0x28e   : > { %v1029_v29 = vpack.c.bf16 (!%p1015_p6), %v826_v28, %v825_v27 }
 0x290   : > { %1030 = vst [vmem:[#allocation9] sm:$0xff] %v1029_v29  }
 0x291 PF: > { %p1092_p7 = scmp.eq.s32.totalorder %s1437_s18, 1  ;;  %s1385_s11 = smov [#allocation9]  }
 0x292   : > { %s846_s22 = sshll.u32 %s1385_s11, 4  ;;  %s847_s22 = int_to_ptr.vmem [resolvable:$true] %s846_s22 }
 0x293   : > { %s1286_s7 = scalar_lea.vmem %s847_s22, 128  ;;  %p1293_p5 = scmp.lt.s32.totalorder %s847_s22, %s847_s22 }
 0x294   : > { %p1287_p9 = scmp.ne.s32.totalorder %s847_s22, %s1286_s7  ;;  %p1294_p8 = scmp.lt.s32.totalorder %s1286_s7, %s1286_s7 }
 0x296   : > { %p1288_p11 = pnand %p1287_p9, %p1092_p7  ;;  %p1295_p12 = por %p1294_p8, %p1293_p5 }
 0x298   : > { %p1289_p13 = pneg %p1288_p11 }
 0x29a   : > { %p1296_p10 = pnand %p1295_p12, %p1289_p13 }
 0x29c   : > { %1299 = shalt.err (!%p1296_p10)
}
 0x29d   : > { %s1300_s29 = scalar_lea.hbm %s1664_s3, 128 }
 0x29e   : > { %p1301_p0 = scmp.ne.s32.totalorder %s1664_s3, %s1300_s29  ;;  %p1306_p2 = scmp.lt.u32.totalorder %s1300_s29, %s1664_s3 }
 0x2a0   : > { %p1302_p1 = pnand %p1301_p0, %p1092_p7 }
 0x2a2   : > { %p1303_p3 = pneg %p1302_p1 }
 0x2a4   : > { %p1308_p4 = pnand %p1306_p2, %p1303_p3 }
 0x2a6   : > { %1311 = shalt.err (!%p1308_p4)
}
 0x2a7   : > { %s1386_s9 = smov 64   ;;  %s1387_s10 = smov 4  }
 0x2a8   : > { %1083 = dma.vmem_to_hbm [thread:$0]  (%p1092_p7), %s847_s22, 128, %s1664_s3, [#allocation5], %s1386_s9, %s1386_s9, %s1387_s10  }
 0x2a9   : > { %1345 = dma.done.wait (%p1092_p7), [#allocation5], 128  }
 0x2aa   : > { %1347 = vsyncadd (%p1092_p7), [#allocation5], 4294967168 }
 0x2ab PF: > { %s18_s17 = sadd.s32 1, %s1370_s17   ;;  %s1678_s12 = smov %s1354_s13 }
 0x2ac   : > { %p15_p6 = scmp.ge.s32.totalorder %s18_s17, 4   ;;  %s1679_s13 = smov %s1358_s14 }
 0x2ad   : > { %s1680_s14 = smov %s1463_s24  ;;  %s1681_s15 = smov %s1366_s16 }
 0x2ae   : > { %s1682_s16 = smov %s1684_s19  ;;  %17 = sbr.rel (!%p15_p6) target bundleno = 6 (0x6), region = 104 }
 0x2b5   :  { %862 = vsyncpa [#allocation4], 1 }
 0x2b6   :  { %864 = vsyncpa [#allocation4 + $0x1], 1 }
 0x2b7   :  { %865 = vsyncpa [#allocation7], 1 }
 0x2b8   :  { %867 = vsyncpa [#allocation7 + $0x1], 1 }
 0x2b9   :  { %868 = vsyncpa [#allocation5], 1 }
 0x2ba   :  { %870 = vsyncpa [#allocation5 + $0x1], 1 }

</bundles_post_ra>
